<compile_context>
chip_gen: v6e
topology: v6e:2x2x1
jax: 0.10.0
libtpu: 0.0.40
codegen_flags: <defaults>
</compile_context>

<pallas_src>
import math
import jax
import jax.numpy as jnp
from jax.experimental import pallas as pl
from jax.experimental.pallas import tpu as pltpu

LOG_SIG_MAX = 2.0
LOG_SIG_MIN = -20.0

LANE = 128          # TPU lane width
SUBLANE = 8         # TPU sublane width
MAX_TB = 512        # max batch-tile rows (85%+ of HBM roofline per docs)


def _round_up(n, m):
    return ((n + m - 1) // m) * m


def _pad2(x, target_shape):
    """Zero-pad a 2-D array up to target_shape (no-op if already that shape)."""
    pr = target_shape[0] - x.shape[0]
    pc = target_shape[1] - x.shape[1]
    if pr == 0 and pc == 0:
        return x
    return jnp.pad(x, ((0, pr), (0, pc)))


def gaussian_policy_kernel(x_ref,
                           w1_ref, b1_ref,
                           w2_ref, b2_ref,
                           wh_ref, bh_ref,
                           out_ref):
    compute_dtype = w1_ref.dtype

    x = x_ref[...]

    # h1 = relu(linear1(state))           (bf16 matmul, f32 accumulate/elementwise)
    h1 = jnp.dot(x, w1_ref[...], preferred_element_type=jnp.float32) + b1_ref[...]
    h1 = jnp.maximum(h1, 0.0).astype(compute_dtype)

    # h2 = relu(linear2(h1))
    h2 = jnp.dot(h1, w2_ref[...], preferred_element_type=jnp.float32) + b2_ref[...]
    h2 = jnp.maximum(h2, 0.0).astype(compute_dtype)

    # fused heads: [mean | log_std] in one matmul + one bias add
    head = jnp.dot(h2, wh_ref[...], preferred_element_type=jnp.float32) + bh_ref[...]

    half = out_ref.shape[-1] // 2
    out_ref[:, :half] = head[:, :half].astype(out_ref.dtype)
    out_ref[:, half:] = jnp.clip(head[:, half:],
                                 LOG_SIG_MIN, LOG_SIG_MAX).astype(out_ref.dtype)


def gaussian_policy_forward(state, params, compute_dtype=jnp.bfloat16):
    """Full GaussianPolicy.forward in one Pallas kernel.

    Returns (mean, log_std), each [B, num_actions] float32.
    """
    B, num_inputs = state.shape
    hidden_dim = params["w1"].shape[1]
    h2_dim = params["w2"].shape[1]
    num_actions = params["wm"].shape[1]

    # lane-dense padded feature dims
    IN_P = _round_up(num_inputs, LANE)
    H_P = _round_up(hidden_dim, LANE)
    H2_P = _round_up(h2_dim, LANE)
    A_P = _round_up(num_actions, LANE)

    # batch tiling: TB multiple of 8, up to MAX_TB rows; pad B to multiple of TB
    TB = min(MAX_TB, _round_up(B, SUBLANE))
    B_P = _round_up(B, TB)
    grid = (B_P // TB,)

    # pad + cast inputs / weights once in the wrapper
    x = _pad2(state, (B_P, IN_P)).astype(compute_dtype)
    w1 = _pad2(params["w1"], (IN_P, H_P)).astype(compute_dtype)
    b1 = _pad2(params["b1"], (1, H_P)).astype(jnp.float32)
    w2 = _pad2(params["w2"], (H_P, H2_P)).astype(compute_dtype)
    b2 = _pad2(params["b2"], (1, H2_P)).astype(jnp.float32)

    # fuse the two heads along the output axis: [h2, A_P | A_P]
    wm = _pad2(params["wm"], (H2_P, A_P))
    wl = _pad2(params["wl"], (H2_P, A_P))
    wh = jnp.concatenate([wm, wl], axis=1).astype(compute_dtype)
    bm = _pad2(params["bm"], (1, A_P))
    bl = _pad2(params["bl"], (1, A_P))
    bh = jnp.concatenate([bm, bl], axis=1).astype(jnp.float32)

    out = pl.pallas_call(
        gaussian_policy_kernel,
        out_shape=jax.ShapeDtypeStruct((B_P, 2 * A_P), jnp.float32),
        grid=grid,
        in_specs=[
            pl.BlockSpec((TB, IN_P), lambda i: (i, 0)),        # state: batch-tiled
            pl.BlockSpec((IN_P, H_P), lambda i: (0, 0)),       # w1: resident
            pl.BlockSpec((1, H_P), lambda i: (0, 0)),          # b1: resident
            pl.BlockSpec((H_P, H2_P), lambda i: (0, 0)),       # w2: resident
            pl.BlockSpec((1, H2_P), lambda i: (0, 0)),         # b2: resident
            pl.BlockSpec((H2_P, 2 * A_P), lambda i: (0, 0)),   # fused heads W
            pl.BlockSpec((1, 2 * A_P), lambda i: (0, 0)),      # fused heads b
        ],
        out_specs=pl.BlockSpec((TB, 2 * A_P), lambda i: (i, 0)),
        compiler_params=pltpu.CompilerParams(
            dimension_semantics=("parallel",)),
    )(x, w1, b1, w2, b2, wh, bh)

    mean = out[:B, :num_actions]
    log_std = out[:B, A_P:A_P + num_actions]
    return mean, log_std


def xavier_uniform(key, fan_in, fan_out):
    # matches torch.nn.init.xavier_uniform_ (gain=1) for a [fan_out, fan_in]
    # weight; we directly build its transpose [fan_in, fan_out].
    bound = math.sqrt(6.0 / (fan_in + fan_out))
    return jax.random.uniform(key, (fan_in, fan_out), jnp.float32, -bound, bound)


def init_params(key, num_inputs, num_actions, hidden_dim):
    h2 = hidden_dim // 2
    k1, k2, k3, k4 = jax.random.split(key, 4)
    return {
        "w1": xavier_uniform(k1, num_inputs, hidden_dim),
        "b1": jnp.zeros((1, hidden_dim), jnp.float32),
        "w2": xavier_uniform(k2, hidden_dim, h2),
        "b2": jnp.zeros((1, h2), jnp.float32),
        "wm": xavier_uniform(k3, h2, num_actions),
        "bm": jnp.zeros((1, num_actions), jnp.float32),
        "wl": xavier_uniform(k4, h2, num_actions),
        "bl": jnp.zeros((1, num_actions), jnp.float32),
    }


if __name__ == "__main__":
    # TODO(synk): sample() (Normal rsample / tanh squashing / log_prob) is stochastic
    # host-side glue around forward(); only the deterministic forward() is in-kernel.
    batch = 8
    num_inputs = 16
    hidden_dim = 32
    num_actions = 8

    key = jax.random.PRNGKey(0)
    pkey, xkey = jax.random.split(key)
    params = init_params(pkey, num_inputs, num_actions, hidden_dim)
    state = jax.random.normal(xkey, (batch, num_inputs), jnp.float32)

    mean, log_std = gaussian_policy_forward(state, params)
    jax.block_until_ready((mean, log_std))

    # sanity checks against plain-JAX f32 reference (kernel uses bf16 inputs
    # with f32 accumulation, so allow bf16-level tolerance)
    h1 = jnp.maximum(state @ params["w1"] + params["b1"], 0.0)
    h2 = jnp.maximum(h1 @ params["w2"] + params["b2"], 0.0)
    mean_ref = h2 @ params["wm"] + params["bm"]
    log_std_ref = jnp.clip(h2 @ params["wl"] + params["bl"], LOG_SIG_MIN, LOG_SIG_MAX)

    assert mean.shape == (batch, num_actions)
    assert log_std.shape == (batch, num_actions)
    assert jnp.allclose(mean, mean_ref, atol=5e-2, rtol=5e-2)
    assert jnp.allclose(log_std, log_std_ref, atol=5e-2, rtol=5e-2)
    assert bool(jnp.all(log_std <= LOG_SIG_MAX)) and bool(jnp.all(log_std >= LOG_SIG_MIN))
    assert bool(jnp.all(jnp.isfinite(mean))) and bool(jnp.all(jnp.isfinite(log_std)))

    print("KERNEL_OK")
</pallas_src>

<mosaic_0001>
module attributes {stable_mosaic.version = 11 : i64} {
  func.func @gaussian_policy_kernel(%arg0: i32, %arg1: memref<8x128xbf16, #tpu.memory_space<vmem>>, %arg2: memref<128x128xbf16, #tpu.memory_space<vmem>>, %arg3: memref<1x128xf32, #tpu.memory_space<vmem>>, %arg4: memref<128x128xbf16, #tpu.memory_space<vmem>>, %arg5: memref<1x128xf32, #tpu.memory_space<vmem>>, %arg6: memref<128x256xbf16, #tpu.memory_space<vmem>>, %arg7: memref<1x256xf32, #tpu.memory_space<vmem>>, %arg8: memref<8x256xf32, #tpu.memory_space<vmem>>) attributes {dimension_semantics = [#tpu.dimension_semantics<parallel>], iteration_bounds = array<i64: 1>, scalar_prefetch = 0 : i64, scratch_operands = 0 : i64, tpu.core_type = #tpu.core_type<tc>, window_params = [{transform_indices = @transform_0, window_bounds = array<i64: 8, 128>}, {pipeline_mode = #tpu.pipeline_mode<synchronous>, transform_indices = @transform_1, window_bounds = array<i64: 128, 128>}, {pipeline_mode = #tpu.pipeline_mode<synchronous>, transform_indices = @transform_2, window_bounds = array<i64: 1, 128>}, {pipeline_mode = #tpu.pipeline_mode<synchronous>, transform_indices = @transform_3, window_bounds = array<i64: 128, 128>}, {pipeline_mode = #tpu.pipeline_mode<synchronous>, transform_indices = @transform_4, window_bounds = array<i64: 1, 128>}, {pipeline_mode = #tpu.pipeline_mode<synchronous>, transform_indices = @transform_5, window_bounds = array<i64: 128, 256>}, {pipeline_mode = #tpu.pipeline_mode<synchronous>, transform_indices = @transform_6, window_bounds = array<i64: 1, 256>}, {transform_indices = @transform_7, window_bounds = array<i64: 8, 256>}]} {
    %c0 = arith.constant 0 : index
    %c0_0 = arith.constant 0 : index
    %0 = vector.load %arg1[%c0, %c0_0] : memref<8x128xbf16, #tpu.memory_space<vmem>>, vector<8x128xbf16>
    %c0_1 = arith.constant 0 : index
    %c0_2 = arith.constant 0 : index
    %1 = vector.load %arg2[%c0_1, %c0_2] : memref<128x128xbf16, #tpu.memory_space<vmem>>, vector<128x128xbf16>
    %cst = arith.constant dense<0.000000e+00> : vector<8x128xf32>
    %2 = tpu.matmul %0, %1, %cst {dimension_numbers = #tpu.dot_dimension_numbers<[1], [0], [0], [1], [0, 0, 1, 1], [], []>} : vector<8x128xbf16>, vector<128x128xbf16>, vector<8x128xf32> -> vector<8x128xf32>
    %c0_3 = arith.constant 0 : index
    %c0_4 = arith.constant 0 : index
    %3 = vector.load %arg3[%c0_3, %c0_4] : memref<1x128xf32, #tpu.memory_space<vmem>>, vector<1x128xf32>
    %4 = vector.broadcast %3 : vector<1x128xf32> to vector<8x128xf32>
    %5 = arith.addf %2, %4 : vector<8x128xf32>
    %cst_5 = arith.constant 0.000000e+00 : f32
    %6 = vector.broadcast %cst_5 : f32 to vector<8x128xf32>
    %7 = arith.maximumf %5, %6 : vector<8x128xf32>
    %8 = arith.truncf %7 : vector<8x128xf32> to vector<8x128xbf16>
    %c0_6 = arith.constant 0 : index
    %c0_7 = arith.constant 0 : index
    %9 = vector.load %arg4[%c0_6, %c0_7] : memref<128x128xbf16, #tpu.memory_space<vmem>>, vector<128x128xbf16>
    %cst_8 = arith.constant dense<0.000000e+00> : vector<8x128xf32>
    %10 = tpu.matmul %8, %9, %cst_8 {dimension_numbers = #tpu.dot_dimension_numbers<[1], [0], [0], [1], [0, 0, 1, 1], [], []>} : vector<8x128xbf16>, vector<128x128xbf16>, vector<8x128xf32> -> vector<8x128xf32>
    %c0_9 = arith.constant 0 : index
    %c0_10 = arith.constant 0 : index
    %11 = vector.load %arg5[%c0_9, %c0_10] : memref<1x128xf32, #tpu.memory_space<vmem>>, vector<1x128xf32>
    %12 = vector.broadcast %11 : vector<1x128xf32> to vector<8x128xf32>
    %13 = arith.addf %10, %12 : vector<8x128xf32>
    %cst_11 = arith.constant 0.000000e+00 : f32
    %14 = vector.broadcast %cst_11 : f32 to vector<8x128xf32>
    %15 = arith.maximumf %13, %14 : vector<8x128xf32>
    %16 = arith.truncf %15 : vector<8x128xf32> to vector<8x128xbf16>
    %c0_12 = arith.constant 0 : index
    %c0_13 = arith.constant 0 : index
    %17 = vector.load %arg6[%c0_12, %c0_13] : memref<128x256xbf16, #tpu.memory_space<vmem>>, vector<128x256xbf16>
    %cst_14 = arith.constant dense<0.000000e+00> : vector<8x256xf32>
    %18 = tpu.matmul %16, %17, %cst_14 {dimension_numbers = #tpu.dot_dimension_numbers<[1], [0], [0], [1], [0, 0, 1, 1], [], []>} : vector<8x128xbf16>, vector<128x256xbf16>, vector<8x256xf32> -> vector<8x256xf32>
    %c0_15 = arith.constant 0 : index
    %c0_16 = arith.constant 0 : index
    %19 = vector.load %arg7[%c0_15, %c0_16] : memref<1x256xf32, #tpu.memory_space<vmem>>, vector<1x256xf32>
    %20 = vector.broadcast %19 : vector<1x256xf32> to vector<8x256xf32>
    %21 = arith.addf %18, %20 : vector<8x256xf32>
    %22 = vector.extract_strided_slice %21 {offsets = [0, 0], sizes = [8, 128], strides = [1, 1]} : vector<8x256xf32> to vector<8x128xf32>
    %c0_17 = arith.constant 0 : index
    %c0_18 = arith.constant 0 : index
    %23 = vector.load %arg8[%c0_17, %c0_18] : memref<8x256xf32, #tpu.memory_space<vmem>>, vector<8x128xf32>
    tpu.vector_store %arg8[%c0_17, %c0_18], %22 {strides = array<i32>} : memref<8x256xf32, #tpu.memory_space<vmem>>, vector<8x128xf32>,
    %24 = vector.extract_strided_slice %21 {offsets = [0, 128], sizes = [8, 128], strides = [1, 1]} : vector<8x256xf32> to vector<8x128xf32>
    %cst_19 = arith.constant -2.000000e+01 : f32
    %cst_20 = arith.constant 2.000000e+00 : f32
    %25 = vector.broadcast %cst_19 : f32 to vector<8x128xf32>
    %26 = arith.maximumf %25, %24 : vector<8x128xf32>
    %27 = vector.broadcast %cst_20 : f32 to vector<8x128xf32>
    %28 = arith.minimumf %27, %26 : vector<8x128xf32>
    %c0_21 = arith.constant 0 : index
    %c128 = arith.constant 128 : index
    %29 = vector.load %arg8[%c0_21, %c128] : memref<8x256xf32, #tpu.memory_space<vmem>>, vector<8x128xf32>
    tpu.vector_store %arg8[%c0_21, %c128], %28 {strides = array<i32>} : memref<8x256xf32, #tpu.memory_space<vmem>>, vector<8x128xf32>,
    return
  }
  func.func @transform_0(%arg0: i32) -> (i32, i32) {
    %c0_i32 = arith.constant 0 : i32
    %c0_i32_0 = arith.constant 0 : i32
    return %arg0, %c0_i32 : i32, i32
  }
  func.func @transform_1(%arg0: i32) -> (i32, i32) {
    %c0_i32 = arith.constant 0 : i32
    %c0_i32_0 = arith.constant 0 : i32
    %c0_i32_1 = arith.constant 0 : i32
    return %c0_i32, %c0_i32_0 : i32, i32
  }
  func.func @transform_2(%arg0: i32) -> (i32, i32) {
    %c0_i32 = arith.constant 0 : i32
    %c0_i32_0 = arith.constant 0 : i32
    %c0_i32_1 = arith.constant 0 : i32
    return %c0_i32, %c0_i32_0 : i32, i32
  }
  func.func @transform_3(%arg0: i32) -> (i32, i32) {
    %c0_i32 = arith.constant 0 : i32
    %c0_i32_0 = arith.constant 0 : i32
    %c0_i32_1 = arith.constant 0 : i32
    return %c0_i32, %c0_i32_0 : i32, i32
  }
  func.func @transform_4(%arg0: i32) -> (i32, i32) {
    %c0_i32 = arith.constant 0 : i32
    %c0_i32_0 = arith.constant 0 : i32
    %c0_i32_1 = arith.constant 0 : i32
    return %c0_i32, %c0_i32_0 : i32, i32
  }
  func.func @transform_5(%arg0: i32) -> (i32, i32) {
    %c0_i32 = arith.constant 0 : i32
    %c0_i32_0 = arith.constant 0 : i32
    %c0_i32_1 = arith.constant 0 : i32
    return %c0_i32, %c0_i32_0 : i32, i32
  }
  func.func @transform_6(%arg0: i32) -> (i32, i32) {
    %c0_i32 = arith.constant 0 : i32
    %c0_i32_0 = arith.constant 0 : i32
    %c0_i32_1 = arith.constant 0 : i32
    return %c0_i32, %c0_i32_0 : i32, i32
  }
  func.func @transform_7(%arg0: i32) -> (i32, i32) {
    %c0_i32 = arith.constant 0 : i32
    %c0_i32_0 = arith.constant 0 : i32
    return %arg0, %c0_i32 : i32, i32
  }
}

</mosaic_0001>

<bundles_post_ra>
// kernel: tpu_custom_call.1
= control target key start
LH: loop header
LB: loop body
LE: loop exit
PB: predicated region body
PF: predicated region fallthrough
CT: control target
= control target key end

     0   :  { %12 = vsyncpa [#allocation3], 0  ;;  %s806_s0 = inlined_call_operand.hbm [shape: bf16[8,128], index: 0, kind: input, shape index: {}]   ;;  %s807_s1 = inlined_call_operand.hbm [shape: bf16[128,128], index: 1, kind: input, shape index: {}]   ;;  %s808_s2 = inlined_call_operand.vmem [shape: f32[1,128], index: 2, kind: input, shape index: {}]   ;;  %s809_s3 = inlined_call_operand.hbm [shape: bf16[128,128], index: 3, kind: input, shape index: {}]   ;;  %s810_s4 = inlined_call_operand.vmem [shape: f32[1,128], index: 4, kind: input, shape index: {}]   ;;  %s811_s5 = inlined_call_operand.hbm [shape: bf16[128,256], index: 5, kind: input, shape index: {}]   ;;  %s812_s6 = inlined_call_operand.vmem [shape: f32[1,256], index: 6, kind: input, shape index: {}]   ;;  %s813_s7 = inlined_call_operand.hbm [shape: f32[8,256], index: 7, kind: output, shape index: {}]  }
   0x1   :  { %13 = vsyncpa [#allocation6], 0 }
   0x2   :  { %14 = vsyncpa [#allocation9], 0 }
   0x3   :  { %15 = vsyncpa [#allocation4], 0  ;;  %s730_s24 = smov [#allocation5]  }
   0x4   :  { %s31_s25 = sshll.u32 %s730_s24, 4  ;;  %s32_s25 = int_to_ptr.vmem [resolvable:$true] %s31_s25 }
   0x5   :  { %s630_s26 = scalar_lea.vmem %s32_s25, 1024  ;;  %p635_p1 = scmp.lt.s32.totalorder %s32_s25, %s32_s25 }
   0x6   :  { %p631_p0 = scmp.ne.s32.totalorder %s32_s25, %s630_s26  ;;  %p636_p2 = scmp.lt.s32.totalorder %s630_s26, %s630_s26 }
   0x8   :  { %p637_p3 = por %p636_p2, %p635_p1 }
   0xa   :  { %p638_p4 = pnand %p637_p3, %p631_p0 }
   0xc   :  { %641 = shalt.err (!%p638_p4)
}
   0xd   :  { %s731_s27 = smov 64   ;;  %s732_s28 = smov 4  }
   0xe   :  { %37 = dma.hbm_to_vmem [thread:$0]  %s807_s1, 1024, %s32_s25, [#allocation6], %s731_s27, %s731_s27, %s732_s28  }
   0xf   :  { %s733_s8 = smov [#allocation2]   ;;  %s734_s10 = smov [#allocation7]  }
  0x10   :  { %s22_s9 = sshll.u32 %s733_s8, 4  ;;  %s45_s11 = sshll.u32 %s734_s10, 4  ;;  %s23_s9 = int_to_ptr.vmem [resolvable:$true] %s22_s9  ;;  %s46_s11 = int_to_ptr.vmem [resolvable:$true] %s45_s11 }
  0x11   :  { %s650_s12 = scalar_lea.vmem %s23_s9, 64  ;;  %p655_p6 = scmp.lt.s32.totalorder %s23_s9, %s23_s9 }
  0x12   :  { %p651_p5 = scmp.ne.s32.totalorder %s23_s9, %s650_s12  ;;  %p656_p7 = scmp.lt.s32.totalorder %s650_s12, %s650_s12 }
  0x14   :  { %p657_p8 = por %p656_p7, %p655_p6 }
  0x16   :  { %p658_p9 = pnand %p657_p8, %p651_p5 }
  0x18   :  { %661 = shalt.err (!%p658_p9)
}
  0x19   :  { %25 = dma.hbm_to_vmem [thread:$0]  %s806_s0, 64, %s23_s9, [#allocation3]  }
  0x1a   :  { %s670_s15 = scalar_lea.vmem %s46_s11, 1024  ;;  %p675_p11 = scmp.lt.s32.totalorder %s46_s11, %s46_s11 }
  0x1b   :  { %p671_p10 = scmp.ne.s32.totalorder %s46_s11, %s670_s15  ;;  %p676_p12 = scmp.lt.s32.totalorder %s670_s15, %s670_s15 }
  0x1d   :  { %p677_p13 = por %p676_p12, %p675_p11 }
  0x1f   :  { %p678_p0 = pnand %p677_p13, %p671_p10 }
  0x21   :  { %681 = shalt.err (!%p678_p0)
}
  0x22   :  { %51 = dma.hbm_to_vmem [thread:$0]  %s809_s3, 1024, %s46_s11, [#allocation6], %s731_s27, %s731_s27, %s732_s28  }
  0x23   :  { %s735_s17 = smov [#allocation8]  }
  0x24   :  { %s59_s18 = sshll.u32 %s735_s17, 4  ;;  %s60_s18 = int_to_ptr.vmem [resolvable:$true] %s59_s18 }
  0x25   :  { %s690_s19 = scalar_lea.vmem %s60_s18, 2048  ;;  %p695_p2 = scmp.lt.s32.totalorder %s60_s18, %s60_s18 }
  0x26   :  { %p691_p1 = scmp.ne.s32.totalorder %s60_s18, %s690_s19  ;;  %p696_p3 = scmp.lt.s32.totalorder %s690_s19, %s690_s19 }
  0x28   :  { %p697_p4 = por %p696_p3, %p695_p2 }
  0x2a   :  { %p698_p5 = pnand %p697_p4, %p691_p1 }
  0x2c   :  { %701 = shalt.err (!%p698_p5)
}
  0x2d   :  { %s736_s0 = smov 128   ;;  %s737_s20 = smov 8  }
  0x2e   :  { %65 = dma.hbm_to_vmem [thread:$0]  %s811_s5, 2048, %s60_s18, [#allocation9], %s736_s0, %s736_s0, %s737_s20  }
  0x2f   :  { %722 = dma.done.wait [#allocation3], 64  }
  0x30   :  { %723 = vsyncadd [#allocation3], 4294967232 }
  0x31   :  { %724 = dma.done.wait [#allocation6], 2048  }
  0x32   :  { %725 = vsyncadd [#allocation6], 4294965248 }
  0x33   :  { %726 = dma.done.wait [#allocation9], 2048  }
  0x34   :  { %727 = vsyncadd [#allocation9], 4294965248  ;;  %v738_v0 = vmov 0.0   ;;  %vm739_vm0 = vmmov 0   ;;  %v582_v1 = vld [vmem:[#allocation5 + $0x38] sm:$0xff]   ;;  %v583_v2 = vld [vmem:[#allocation5 + $0x30] sm:$0xff]   ;;  %v326_v51 = vlaneseq }
  0x35   :  { %530 = vmatprep.subr.bf16.mxu0 %v738_v0  ;;  %546 = vmatprep.mubr.msk.bf16.mxu0 %vm739_vm0, %v738_v0  ;;  %v584_v3 = vld [vmem:[#allocation5 + $0x28] sm:$0xff]   ;;  %v590_v4 = vld [vmem:[#allocation7 + $0x38] sm:$0xff]   ;;  %v585_v5 = vld [vmem:[#allocation5 + $0x20] sm:$0xff]   ;;  %v740_v42 = vmov 0  }
  0x36   :  { %550 = vmatprep.subr.bf16.mxu1 %v738_v0  ;;  %566 = vmatprep.mubr.msk.bf16.mxu1 %vm739_vm0, %v738_v0  ;;  %v591_v6 = vld [vmem:[#allocation7 + $0x30] sm:$0xff]   ;;  %v586_v7 = vld [vmem:[#allocation5 + $0x18] sm:$0xff]   ;;  %v592_v8 = vld [vmem:[#allocation7 + $0x28] sm:$0xff]   ;;  %v327_v52 = vshrl.u32 %v326_v51, 7 }
  0x37   :  { %531 = vmatpush3.bf16.msra.mxu0 %v582_v1  ;;  %551 = vmatpush3.bf16.msra.mxu1 %v590_v4  ;;  %v587_v9 = vld [vmem:[#allocation5 + $0x10] sm:$0xff]   ;;  %v593_v10 = vld [vmem:[#allocation7 + $0x20] sm:$0xff]   ;;  %v588_v11 = vld [vmem:[#allocation5 + $0x8] sm:$0xff]  }
  0x38   :  { %532 = vmatprep.subr.bf16.mxu0 %v738_v0  ;;  %552 = vmatprep.subr.bf16.mxu1 %v738_v0  ;;  %v594_v12 = vld [vmem:[#allocation7 + $0x18] sm:$0xff]   ;;  %v589_v13 = vld [vmem:[#allocation5] sm:$0xff]   ;;  %v595_v14 = vld [vmem:[#allocation7 + $0x10] sm:$0xff]   ;;  %v328_v53 = vsub.s32 0, %v327_v52  ;;  %v332_v55 = vsub.s32 1, %v327_v52 }
  0x39   :  { %v81_v15 = vld [vmem:[#allocation2] sm:$0xf]  ;;  %v596_v16 = vld [vmem:[#allocation7 + $0x8] sm:$0xff]   ;;  %v597_v17 = vld [vmem:[#allocation7] sm:$0xff]  }
  0x3a   :  { %v598_v18 = vld [vmem:[#allocation8 + $0x70] ss:$8 sps:$4 sm:$0xff]   ;;  %v600_v19 = vld [vmem:[#allocation8 + $0x74] ss:$8 sps:$4 sm:$0xff]   ;;  %v603_v20 = vld [vmem:[#allocation8 + $0x64] ss:$8 sps:$4 sm:$0xff]  }
  0x3b   :  { %533 = vmatpush3.bf16.msra.mxu0 %v583_v2  ;;  %553 = vmatpush3.bf16.msra.mxu1 %v591_v6  ;;  %v601_v21 = vld [vmem:[#allocation8 + $0x60] ss:$8 sps:$4 sm:$0xff]   ;;  %v606_v22 = vld [vmem:[#allocation8 + $0x54] ss:$8 sps:$4 sm:$0xff]   ;;  %v604_v23 = vld [vmem:[#allocation8 + $0x50] ss:$8 sps:$4 sm:$0xff]  }
  0x3c   :  { %534 = vmatprep.subr.bf16.mxu0 %v738_v0  ;;  %554 = vmatprep.subr.bf16.mxu1 %v738_v0  ;;  %v609_v24 = vld [vmem:[#allocation8 + $0x44] ss:$8 sps:$4 sm:$0xff]   ;;  %v607_v25 = vld [vmem:[#allocation8 + $0x40] ss:$8 sps:$4 sm:$0xff]   ;;  %v612_v26 = vld [vmem:[#allocation8 + $0x34] ss:$8 sps:$4 sm:$0xff]  }
  0x3d   :  { %v610_v27 = vld [vmem:[#allocation8 + $0x30] ss:$8 sps:$4 sm:$0xff]   ;;  %v615_v28 = vld [vmem:[#allocation8 + $0x24] ss:$8 sps:$4 sm:$0xff]   ;;  %v613_v29 = vld [vmem:[#allocation8 + $0x20] ss:$8 sps:$4 sm:$0xff]  }
  0x3e   :  { %v618_v30 = vld [vmem:[#allocation8 + $0x14] ss:$8 sps:$4 sm:$0xff]   ;;  %v616_v31 = vld [vmem:[#allocation8 + $0x10] ss:$8 sps:$4 sm:$0xff]   ;;  %v621_v40 = vld [vmem:[#allocation8 + $0x4] ss:$8 sps:$4 sm:$0xff]  }
  0x3f   :  { %535 = vmatpush3.bf16.msra.mxu0 %v584_v3  ;;  %555 = vmatpush3.bf16.msra.mxu1 %v592_v8  ;;  %v478_v32 = vld [vmem:[%s808_s2] ss:$0 sm:$0xff]  ;;  %v619_v41 = vld [vmem:[#allocation8] ss:$8 sps:$4 sm:$0xff]  }
  0x40   :  { %536 = vmatprep.subr.bf16.mxu0 %v738_v0  ;;  %556 = vmatprep.subr.bf16.mxu1 %v738_v0  ;;  %v487_v43 = vld [vmem:[%s810_s4] ss:$0 sm:$0xff]  ;;  %s741_s4 = smov [#allocation10]  }
  0x41   :  { %v324_v54 = vld [vmem:[%s812_s6] sm:$0x3]  ;;  %s467_s26 = sshll.u32 %s741_s4, 4  ;;  %s468_s26 = int_to_ptr.vmem [resolvable:$true] %s467_s26 }
  0x42   :  { %v329_v56 = vrot.slane %v324_v54, %v328_v53  ;;  %v333_v57 = vrot.slane %v324_v54, %v332_v55  ;;  %s702_s27 = scalar_lea.vmem %s468_s26, 256  ;;  %p707_p7 = scmp.lt.s32.totalorder %s468_s26, %s468_s26 }
  0x43   :  { %537 = vmatpush3.bf16.msra.mxu0 %v585_v5  ;;  %557 = vmatpush3.bf16.msra.mxu1 %v593_v10  ;;  %p703_p6 = scmp.ne.s32.totalorder %s468_s26, %s702_s27  ;;  %p708_p8 = scmp.lt.s32.totalorder %s702_s27, %s702_s27 }
  0x44   :  { %538 = vmatprep.subr.bf16.mxu0 %v738_v0  ;;  %558 = vmatprep.subr.bf16.mxu1 %v738_v0 }
  0x45   :  { %p709_p9 = por %p708_p8, %p707_p7 }
  0x47   :  { %539 = vmatpush3.bf16.msra.mxu0 %v586_v7  ;;  %559 = vmatpush3.bf16.msra.mxu1 %v594_v12  ;;  %p710_p10 = pnand %p709_p9, %p703_p6 }
  0x48   :  { %540 = vmatprep.subr.bf16.mxu0 %v738_v0  ;;  %560 = vmatprep.subr.bf16.mxu1 %v738_v0 }
  0x4b   :  { %541 = vmatpush3.bf16.msra.mxu0 %v587_v9  ;;  %561 = vmatpush3.bf16.msra.mxu1 %v595_v14 }
  0x4c   :  { %542 = vmatprep.subr.bf16.mxu0 %v738_v0  ;;  %562 = vmatprep.subr.bf16.mxu1 %v738_v0 }
  0x4f   :  { %543 = vmatpush3.bf16.msra.mxu0 %v588_v11  ;;  %563 = vmatpush3.bf16.msra.mxu1 %v596_v16 }
  0x50   :  { %544 = vmatprep.subr.bf16.mxu0 %v738_v0  ;;  %564 = vmatprep.subr.bf16.mxu1 %v738_v0 }
  0x53   :  { %545 = vmatpush3.bf16.msra.mxu0 %v589_v13  ;;  %565 = vmatpush3.bf16.msra.mxu1 %v597_v17 }
  0x54   :  { %416 = vmatprep.subr.bf16.mxu0 %v600_v19 }
  0x56   :  { %547 = vmatmul.mubr.bf16.vlgmr.msra.gmra.mxu0 %v81_v15 }
  0x57   :  { %417 = vmatpush1.bf16.msra.mxu0 %v598_v18  ;;  %448 = vmatprep.mubr.bf16.mxu0 %v740_v42 }
  0x58   :  { %418 = vmatprep.subr.bf16.mxu0 %v603_v20 }
  0x5b   :  { %419 = vmatpush1.bf16.msra.mxu0 %v601_v21 }
  0x5c   :  { %420 = vmatprep.subr.bf16.mxu0 %v606_v22 }
  0x5f   :  { %421 = vmatpush1.bf16.msra.mxu0 %v604_v23 }
  0x60   :  { %422 = vmatprep.subr.bf16.mxu0 %v609_v24 }
  0x63   :  { %423 = vmatpush1.bf16.msra.mxu0 %v607_v25 }
  0x64   :  { %424 = vmatprep.subr.bf16.mxu0 %v612_v26 }
  0x67   :  { %425 = vmatpush1.bf16.msra.mxu0 %v610_v27 }
  0x68   :  { %426 = vmatprep.subr.bf16.mxu0 %v615_v28 }
  0x6b   :  { %427 = vmatpush1.bf16.msra.mxu0 %v613_v29 }
  0x6c   :  { %428 = vmatprep.subr.bf16.mxu0 %v618_v30 }
  0x6f   :  { %429 = vmatpush1.bf16.msra.mxu0 %v616_v31 }
  0x70   :  { %430 = vmatprep.subr.bf16.mxu0 %v621_v40 }
  0x73   :  { %431 = vmatpush1.bf16.msra.mxu0 %v619_v41 }
 0x116   :  { %v187_v33 = vpop.f32.mrf.mxu0 }
 0x117   :  { %v188_v34 = vadd.f32 %v478_v32, %v187_v33 }
 0x118   :  { %v548_v35 = vpop.f32.mrf.mxu0 }
 0x119   :  { %v193_v36 = vmax.f32 %v188_v34, 0.0 }
 0x11a   :  { %v190_v37 = vpop.f32.mrf.mxu0 }
 0x11b   :  { %v194_v38 = vpack.c.bf16 %v193_v36, %v193_v36 }
 0x11c   :  { %v549_v39 = vpop.f32.mrf.mxu0 }
 0x11d   :  { %567 = vmatmul.mubr.bf16.vlgmr.msra.gmra.mxu1 %v194_v38 }
 0x1dd   :  { %v300_v44 = vpop.f32.mrf.mxu1 }
 0x1de   :  { %v301_v45 = vadd.f32 %v487_v43, %v300_v44 }
 0x1df   :  { %v568_v46 = vpop.f32.mrf.mxu1 }
 0x1e0   :  { %v306_v47 = vmax.f32 %v301_v45, 0.0 }
 0x1e1   :  { %v303_v48 = vpop.f32.mrf.mxu1 }
 0x1e2   :  { %v307_v49 = vpack.c.bf16 %v306_v47, %v306_v47 }
 0x1e3   :  { %v569_v50 = vpop.f32.mrf.mxu1 }
 0x1e4   :  { %449 = vmatmul.mubr.bf16.vlgmr.msra.gmra.mxu0 %v307_v49 }
 0x2a4   :  { %v450_v58 = vpop.f32.mrf.mxu0 }
 0x2a5   :  { %v451_v59 = vadd.f32 %v450_v58, %v329_v56 }
 0x2a6   :  { %v452_v60 = vpop.f32.mrf.mxu0 }
 0x2a7   :  { %457 = vst [vmem:[#allocation10] sm:$0xff] %v451_v59  ;;  %v453_v61 = vadd.f32 %v452_v60, %v333_v57 }
 0x2a8   :  { %v454_v62 = vpop.f32.mrf.mxu0 }
 0x2a9   :  { %v458_v63 = vmax.f32 %v453_v61, -20.0 }
 0x2aa   :  { %v455_v0 = vpop.f32.mrf.mxu0 }
 0x2ab   :  { %v459_v1 = vmin.f32 %v458_v63, 2.0 }
 0x2ad   :  { %460 = vst [vmem:[#allocation10 + $0x8] sm:$0xff] %v459_v1 }
 0x2ae   :  { %713 = shalt.err (!%p710_p10)
}
 0x2af   :  { %470 = dma.vmem_to_hbm [thread:$0]  %s468_s26, 256, %s813_s7, [#allocation4]  }
 0x2b0   :  { %728 = dma.done.wait [#allocation4], 256  }
 0x2b1   :  { %729 = vsyncadd [#allocation4], 4294967040 }
 0x2b2   :  { %474 = vsyncpa [#allocation3], 1 }
 0x2b3   :  { %475 = vsyncpa [#allocation6], 1 }
 0x2b4   :  { %476 = vsyncpa [#allocation9], 1 }
 0x2b5   :  { %477 = vsyncpa [#allocation4], 1 }

</bundles_post_ra>
